<compile_context>
chip_gen: v7x
topology: tpu7x:2x2x1
jax: 0.10.0
libtpu: 0.0.40
codegen_flags: <defaults>
</compile_context>

<pallas_src>
import math
from functools import partial

import jax
import jax.numpy as jnp
from jax import lax
from jax.experimental import pallas as pl
from jax.experimental.pallas import tpu as pltpu


def _round_up(x, m):
    return ((x + m - 1) // m) * m


def _compiler_params(semantics, bytes_estimate):
    # Explicit VMEM budget (review item): raise above the 16/32 MiB default
    # scoped limits, stay under v7x's 64 MiB physical VMEM.
    limit = int(min(max(2 * bytes_estimate, 32 * 1024 * 1024), 64 * 1024 * 1024))
    return pltpu.CompilerParams(dimension_semantics=semantics,
                                vmem_limit_bytes=limit)


# Contract the minor (lane) dim of both operands == x @ w^T / q @ k^T without
# materializing a transpose (MXU transposed-operand path).
_TRANS_B = (((1,), (1,)), ((), ()))


# ---------------------------------------------------------------------------
# Generic linear kernel:  out = x @ w^T + b
#   x: (TB, K) bf16   w: (N, K) torch (out, in) layout, bf16   b: (1, N) f32
# ---------------------------------------------------------------------------
def linear_kernel(x_ref, w_ref, b_ref, o_ref):
    acc = lax.dot_general(x_ref[...], w_ref[...], _TRANS_B,
                          preferred_element_type=jnp.float32)
    o_ref[...] = (acc + b_ref[...]).astype(o_ref.dtype)


def linear_pallas(x, w, b, *, out_dtype=jnp.float32, token_block=256):
    """x: (T, K), w: (N, K) (torch layout), b: (N,) -> (T, N)."""
    T, K = x.shape
    N = w.shape[0]

    TB = min(token_block, _round_up(T, 8))
    # Keep >= 2 grid steps so both v7x TensorCores get work.
    if _round_up(T, TB) // TB < 2 and TB >= 16:
        TB = _round_up(TB // 2, 8)
    T_pad = _round_up(T, TB)
    if T_pad != T:
        x = jnp.pad(x, ((0, T_pad - T), (0, 0)))

    bytes_est = (2 * TB * K * x.dtype.itemsize            # activation blocks
                 + N * K * w.dtype.itemsize               # resident weight (1 buf)
                 + N * 4                                   # bias
                 + 2 * TB * N * jnp.dtype(out_dtype).itemsize
                 + TB * N * 4)                             # f32 accumulator temp

    out = pl.pallas_call(
        linear_kernel,
        out_shape=jax.ShapeDtypeStruct((T_pad, N), out_dtype),
        grid_spec=pltpu.PrefetchScalarGridSpec(
            num_scalar_prefetch=0,
            grid=(T_pad // TB,),
            in_specs=[
                pl.BlockSpec((TB, K), lambda i: (i, 0)),
                # Resident weight/bias: constant index_map -> single-buffered.
                pl.BlockSpec((N, K), lambda i: (0, 0),
                             pipeline_mode=pl.Buffered(1)),
                pl.BlockSpec((1, N), lambda i: (0, 0),
                             pipeline_mode=pl.Buffered(1)),
            ],
            out_specs=pl.BlockSpec((TB, N), lambda i: (i, 0)),
        ),
        compiler_params=_compiler_params(("parallel",), bytes_est),
    )(x, w, b.reshape(1, N).astype(jnp.float32))
    return out[:T]


# ---------------------------------------------------------------------------
# Gaussian-kernel attention core.
# One (batch element, query tile) per grid step; all heads handled per step.
#   inputs : mixed (B, S, 3H) bf16  (per head chunk: [q | k | v] of width hph)
#   outputs: scores (B*nh, S, S) f32   (matmul_result, torch ordering g=b*nh+h)
#            ctx    (B, S, H) bf16     (already in the layout the dense wants)
# ---------------------------------------------------------------------------
def gk_attention_kernel(scale_ref, mq_ref, mkv_ref, scores_ref, ctx_ref, *,
                        num_heads, hph):
    scale = scale_ref[0]                      # -0.5 / sqrt(hph), SMEM scalar
    mq = mq_ref[0]                            # (TQ, 3H) bf16
    mkv = mkv_ref[0]                          # (S,  3H) bf16

    ones_row = jnp.ones((1, hph), jnp.float32)   # skinny ones-vector (hoisted)

    ctx_parts = []
    for h in range(num_heads):                # static unroll over heads
        base = 3 * hph * h
        q = mq[:, base:base + hph]                     # (TQ, hph) bf16
        k = mkv[:, base + hph:base + 2 * hph]          # (S, hph)  bf16
        v = mkv[:, base + 2 * hph:base + 3 * hph]      # (S, hph)  bf16

        qf = q.astype(jnp.float32)
        kf = k.astype(jnp.float32)
        # Squared norms: row-sum reduction + (1,hph) ones-vector matmul
        # (replaces the two full SxhphxS ones-matmuls).
        q_sq = jnp.sum(qf * qf, axis=-1, keepdims=True)             # (TQ, 1)
        k_sq = lax.dot_general(ones_row, kf * kf, _TRANS_B,
                               preferred_element_type=jnp.float32)  # (1, S)
        qk = lax.dot_general(q, k, _TRANS_B,
                             preferred_element_type=jnp.float32)    # (TQ, S)

        scores = (q_sq + k_sq - 2.0 * qk) * scale                   # f32
        scores_ref[h] = scores                                      # matmul_result

        # Exp_grad (mask=None) + eval-mode dropout (identity); bf16 exp feeds a
        # bf16 MXU pass anyway (f32 scores are only needed for the stored output).
        probs = jnp.exp(scores.astype(jnp.bfloat16))                # (TQ, S)
        ctx_parts.append(jnp.dot(probs, v,
                                 preferred_element_type=jnp.float32))  # (TQ, hph)

    # Lane-dense (TQ, H) context slab, already in [batch-major, S, H] layout.
    ctx_ref[0] = jnp.concatenate(ctx_parts, axis=-1).astype(ctx_ref.dtype)


def gaussian_attention_pallas(mixed, num_heads, scale, *, q_block=256):
    """mixed: (B, S, 3H) bf16 -> (scores (B*nh, S, S) f32, ctx (B, S, H) bf16)."""
    B, S, three_h = mixed.shape
    H = three_h // 3
    hph = H // num_heads

    # Query-axis tiling (bounds the per-step scores block for large S).
    TQ = S
    if S > q_block:
        for cand in (q_block, 256, 128, 64, 32, 16, 8):
            if cand <= S and S % cand == 0 and cand % 8 == 0:
                TQ = cand
                break

    scale_arr = jnp.full((1,), scale, jnp.float32)
    bytes_est = (2 * TQ * three_h * 2
                 + 2 * S * three_h * 2
                 + 2 * num_heads * TQ * S * 4
                 + 2 * TQ * H * 2
                 + 4 * TQ * S * 4)

    scores, ctx = pl.pallas_call(
        partial(gk_attention_kernel, num_heads=num_heads, hph=hph),
        out_shape=(
            jax.ShapeDtypeStruct((B * num_heads, S, S), jnp.float32),
            jax.ShapeDtypeStruct((B, S, H), jnp.bfloat16),
        ),
        grid_spec=pltpu.PrefetchScalarGridSpec(
            num_scalar_prefetch=0,
            grid=(B, S // TQ),
            in_specs=[
                pl.BlockSpec(memory_space=pltpu.MemorySpace.SMEM),        # scale
                pl.BlockSpec((1, TQ, three_h), lambda b, qi: (b, qi, 0)),  # q rows
                pl.BlockSpec((1, S, three_h), lambda b, qi: (b, 0, 0)),    # k/v rows
            ],
            out_specs=[
                pl.BlockSpec((num_heads, TQ, S), lambda b, qi: (b, qi, 0)),
                pl.BlockSpec((1, TQ, H), lambda b, qi: (b, qi, 0)),
            ],
        ),
        compiler_params=_compiler_params(("parallel", "parallel"), bytes_est),
    )(scale_arr, mixed, mixed)
    return scores, ctx


# ---------------------------------------------------------------------------
# Full AttentionComponent_grad forward
# ---------------------------------------------------------------------------
def attention_component_forward(hidden_states, w_qkv, b_qkv, w_dense, b_dense,
                                num_heads, attention_mask=None):
    """hidden_states: (S, B, H) f32 ('[S B H]' layout). Returns (out, matmul_result, {})."""
    # TODO(synk): additive attention_mask (Exp_grad) and training-mode attention
    #             dropout are not wired in; eval / mask=None path only.
    assert attention_mask is None
    S, B, H = hidden_states.shape
    hph = H // num_heads

    # Batch-major internal layout: one transpose in, one out, replaces the
    # per-head q/k/v + ctx transposes of the previous version.  bf16 at the
    # kernel boundary (params would already live in bf16 in a real model).
    x = hidden_states.transpose(1, 0, 2).reshape(B * S, H).astype(jnp.bfloat16)
    w_qkv_bf = w_qkv.astype(jnp.bfloat16)        # torch (out, in) layout kept
    w_dense_bf = w_dense.astype(jnp.bfloat16)

    mixed = linear_pallas(x, w_qkv_bf, b_qkv, out_dtype=jnp.bfloat16)  # (B*S, 3H)
    mixed = mixed.reshape(B, S, 3 * H)

    scale = -0.5 / math.sqrt(hph)                                      # -norm_factor*0.5
    scores, ctx = gaussian_attention_pallas(mixed, num_heads, scale)   # (G,S,S),(B,S,H)

    out = linear_pallas(ctx.reshape(B * S, H), w_dense_bf, b_dense,
                        out_dtype=jnp.float32)                         # (B*S, H)
    out = out.reshape(B, S, H).transpose(1, 0, 2)                      # [S, B, H]

    attention_outputs = {}
    return out, scores, attention_outputs


# ---------------------------------------------------------------------------
# Pure-JAX f32 reference (mirrors the torch code literally)
# ---------------------------------------------------------------------------
def reference_forward(hidden_states, w_qkv, b_qkv, w_dense, b_dense, num_heads):
    S, B, H = hidden_states.shape
    hph = H // num_heads
    G = B * num_heads

    mixed = jnp.einsum('sbh,oh->sbo', hidden_states, w_qkv) + b_qkv
    mixed = mixed.reshape(S, B, num_heads, 3 * hph)
    q = mixed[..., :hph].reshape(S, G, hph).transpose(1, 0, 2)
    k = mixed[..., hph:2 * hph].reshape(S, G, hph).transpose(1, 0, 2)
    v = mixed[..., 2 * hph:].reshape(S, G, hph).transpose(1, 0, 2)

    k_t = jnp.swapaxes(k, -1, -2)
    mat_a = (q ** 2.0) @ jnp.ones((hph, S), jnp.float32)
    mat_b = jnp.ones((S, hph), jnp.float32) @ (k_t ** 2.0)
    dist = mat_a + mat_b - 2.0 * (q @ k_t)
    scores = dist * (-0.5 / math.sqrt(hph))
    probs = jnp.exp(scores)
    ctx = probs @ v
    ctx = ctx.reshape(B, num_heads, S, hph).transpose(2, 0, 1, 3).reshape(S, B, H)
    out = jnp.einsum('sbh,oh->sbo', ctx, w_dense) + b_dense
    return out, scores


if __name__ == "__main__":
    # Small config consistent with the module: [S, B, H] layout.
    S, B, H = 8, 2, 32
    NUM_HEADS = 2                      # hidden_per_head = 16
    G = B * NUM_HEADS

    key = jax.random.PRNGKey(0)
    k_x, k_wq, k_bq, k_wd, k_bd = jax.random.split(key, 5)

    hidden = jax.random.normal(k_x, (S, B, H), dtype=jnp.float32)
    w_qkv = 0.1 * jax.random.normal(k_wq, (3 * H, H), dtype=jnp.float32)   # torch (out, in)
    b_qkv = 0.02 * jax.random.normal(k_bq, (3 * H,), dtype=jnp.float32)    # qkv_bias=True
    w_dense = 0.1 * jax.random.normal(k_wd, (H, H), dtype=jnp.float32)     # torch (out, in)
    b_dense = 0.02 * jax.random.normal(k_bd, (H,), dtype=jnp.float32)      # use_bias=True

    out, matmul_result, attn_outputs = attention_component_forward(
        hidden, w_qkv, b_qkv, w_dense, b_dense, NUM_HEADS, attention_mask=None)
    out = jax.block_until_ready(out)

    # Check against a pure-JAX f32 reference of the exact same math.
    ref_out, ref_scores = reference_forward(
        hidden, w_qkv, b_qkv, w_dense, b_dense, NUM_HEADS)

    assert out.shape == (S, B, H)
    assert matmul_result.shape == (G, S, S)
    assert isinstance(attn_outputs, dict) and len(attn_outputs) == 0
    assert bool(jnp.isfinite(out).all())

    scores_err = float(jnp.max(jnp.abs(matmul_result - ref_scores)))
    out_err = float(jnp.max(jnp.abs(out - ref_out)))
    # Tolerances account for bf16 operand storage / bf16 exp (f32 MXU accumulation).
    assert jnp.allclose(matmul_result, ref_scores, rtol=2e-2, atol=2e-2), scores_err
    assert jnp.allclose(out, ref_out, rtol=3e-2, atol=3e-2), out_err

    print("KERNEL_OK")
</pallas_src>

<mosaic_0001>
module attributes {stable_mosaic.version = 11 : i64} {
  func.func @linear_kernel(%arg0: i32, %arg1: memref<8x32xbf16, #tpu.memory_space<vmem>>, %arg2: memref<96x32xbf16, #tpu.memory_space<vmem>>, %arg3: memref<1x96xf32, #tpu.memory_space<vmem>>, %arg4: memref<8x96xbf16, #tpu.memory_space<vmem>>) attributes {dimension_semantics = [#tpu.dimension_semantics<parallel>], iteration_bounds = array<i64: 2>, scalar_prefetch = 0 : i64, scratch_operands = 0 : i64, tpu.core_type = #tpu.core_type<tc>, window_params = [{transform_indices = @transform_0, window_bounds = array<i64: 8, 32>}, {pipeline_mode = #tpu.pipeline_mode<synchronous>, transform_indices = @transform_1, window_bounds = array<i64: 96, 32>}, {pipeline_mode = #tpu.pipeline_mode<synchronous>, transform_indices = @transform_2, window_bounds = array<i64: 1, 96>}, {transform_indices = @transform_3, window_bounds = array<i64: 8, 96>}]} {
    %c0 = arith.constant 0 : index
    %c0_0 = arith.constant 0 : index
    %0 = vector.load %arg1[%c0, %c0_0] : memref<8x32xbf16, #tpu.memory_space<vmem>>, vector<8x32xbf16>
    %c0_1 = arith.constant 0 : index
    %c0_2 = arith.constant 0 : index
    %1 = vector.load %arg2[%c0_1, %c0_2] : memref<96x32xbf16, #tpu.memory_space<vmem>>, vector<96x32xbf16>
    %cst = arith.constant dense<0.000000e+00> : vector<8x96xf32>
    %2 = tpu.matmul %0, %1, %cst {dimension_numbers = #tpu.dot_dimension_numbers<[1], [1], [0], [0], [0, 0, 1, 0], [], []>} : vector<8x32xbf16>, vector<96x32xbf16>, vector<8x96xf32> -> vector<8x96xf32>
    %c0_3 = arith.constant 0 : index
    %c0_4 = arith.constant 0 : index
    %3 = vector.load %arg3[%c0_3, %c0_4] : memref<1x96xf32, #tpu.memory_space<vmem>>, vector<1x96xf32>
    %4 = vector.broadcast %3 : vector<1x96xf32> to vector<8x96xf32>
    %5 = arith.addf %2, %4 : vector<8x96xf32>
    %6 = arith.truncf %5 : vector<8x96xf32> to vector<8x96xbf16>
    %c0_5 = arith.constant 0 : index
    %c0_6 = arith.constant 0 : index
    %7 = vector.load %arg4[%c0_5, %c0_6] : memref<8x96xbf16, #tpu.memory_space<vmem>>, vector<8x96xbf16>
    tpu.vector_store %arg4[%c0_5, %c0_6], %6 {strides = array<i32>} : memref<8x96xbf16, #tpu.memory_space<vmem>>, vector<8x96xbf16>,
    return
  }
  func.func @transform_0(%arg0: i32) -> (i32, i32) {
    %c0_i32 = arith.constant 0 : i32
    %c0_i32_0 = arith.constant 0 : i32
    return %arg0, %c0_i32 : i32, i32
  }
  func.func @transform_1(%arg0: i32) -> (i32, i32) {
    %c0_i32 = arith.constant 0 : i32
    %c0_i32_0 = arith.constant 0 : i32
    %c0_i32_1 = arith.constant 0 : i32
    return %c0_i32, %c0_i32_0 : i32, i32
  }
  func.func @transform_2(%arg0: i32) -> (i32, i32) {
    %c0_i32 = arith.constant 0 : i32
    %c0_i32_0 = arith.constant 0 : i32
    %c0_i32_1 = arith.constant 0 : i32
    return %c0_i32, %c0_i32_0 : i32, i32
  }
  func.func @transform_3(%arg0: i32) -> (i32, i32) {
    %c0_i32 = arith.constant 0 : i32
    %c0_i32_0 = arith.constant 0 : i32
    return %arg0, %c0_i32 : i32, i32
  }
}

</mosaic_0001>

<bundles_post_ra>
// kernel: tpu_custom_call.1
= control target key start
LH: loop header
LB: loop body
LE: loop exit
PB: predicated region body
PF: predicated region fallthrough
CT: control target
= control target key end

     0   :  { %8 = vsyncpa [#allocation3], 0  ;;  %s658_s0 = inlined_call_operand.vmem [shape: bf16[16,32], index: 0, kind: input, shape index: {}]   ;;  %s659_s1 = inlined_call_operand.vmem [shape: bf16[96,32], index: 1, kind: input, shape index: {}]   ;;  %s660_s2 = inlined_call_operand.vmem [shape: f32[1,96], index: 2, kind: input, shape index: {}]   ;;  %s661_s3 = inlined_call_operand.hbm [shape: bf16[16,96], index: 3, kind: output, shape index: {}]  }
   0x1   :  { %10 = vsyncpa [#allocation3 + $0x1], 0  ;;  %s530_s12 = smov 0   ;;  %s532_s13 = smov 0  }
   0x2   :  { %s534_s14 = smov 0   ;;  %s536_s15 = smov 0  }
   0x3 LB: > { %s551_s16 = sadd.s32 4294967295, %s505_s15   ;;  %s355_s17 = sadd.s32 4294967294, %s505_s15   ;;  %s505_s15 = sphi %s536_s15, %s667_s15   ;;  %s501_s14 = sphi %s534_s14, %s666_s14   ;;  %s497_s13 = sphi %s532_s13, %s665_s13   ;;  %s493_s12 = sphi %s530_s12, %s664_s12  }
   0x4   : > { %s555_s18 = sadd.s32 1, %s505_s15   ;;  %s91_s19 = sadd.s32 1, %s501_s14 }
   0x5   : > { %s88_s20 = ssub.s32 %s505_s15, %s555_s18  ;;  %p101_p0 = scmp.ne.s32.totalorder %s501_s14, %s497_s13 }
   0x6   : > { %p89_p1 = scmp.eq.s32.totalorder %s88_s20, 0  ;;  %p102_p2 = scmp.eq.s32.totalorder %s551_s16, 1 }
   0x7   : > { %p107_p3 = scmp.ne.s32.totalorder %s497_s13, %s493_s12  ;;  %p108_p4 = scmp.eq.s32.totalorder %s355_s17, 1 }
   0x8   : > { %s566_s21 = scalar_select %p89_p1, %s501_s14, %s91_s19  }
   0x9   : > { %p568_p5 = por %p102_p2, %p101_p0  ;;  %p572_p6 = por %p108_p4, %p107_p3 }
   0xa   : > { %p358_p7 = scmp.ge.s32.totalorder %s505_s15, 1  ;;  %p139_p8 = scmp.lt.s32.totalorder %s505_s15, 3 }
   0xc   : > { %p140_p9 = pnand %p358_p7, %p139_p8 }
   0xd   : > { %v437_v0 = vld [vmem:[%s659_s1] sm:$0xff] (!%p140_p9)   ;;  %v507_v1 = vmov (!%p140_p9), 0.0   ;;  %vm217_vm0 = vcmask (!%p140_p9), 261120   ;;  %v438_v3 = vld [vmem:[%s659_s1 + $0x8] sm:$0xff] (!%p140_p9)   ;;  %vm508_vm1 = vmmov (!%p140_p9), 0   ;;  %v439_v5 = vld [vmem:[%s659_s1 + $0x10] sm:$0xff] (!%p140_p9)  }
   0xe   : > { %143 = sbr.rel (%p140_p9) target bundleno = 292 (0x124), region = 32  ;;  %380 = vmatprep.subr.bf16.mxu0 (!%p140_p9), %v507_v1  ;;  %v222_v2 = vsel (!%p140_p9), %vm217_vm0, %v437_v0, 0  ;;  %392 = vmatprep.mubr.msk.bf16.mxu0 (!%p140_p9), %vm508_vm1, %v507_v1  ;;  %v225_v4 = vsel (!%p140_p9), %vm217_vm0, %v438_v3, 0  ;;  %v228_v6 = vsel (!%p140_p9), %vm217_vm0, %v439_v5, 0  ;;  %v440_v7 = vld [vmem:[%s659_s1 + $0x18] sm:$0xff] (!%p140_p9)   ;;  %v441_v9 = vld [vmem:[%s659_s1 + $0x20] sm:$0xff] (!%p140_p9)  }
   0xf   : > { %381 = vmatpush3.bf16.xpose.msra.mxu0 (!%p140_p9), %v222_v2  ;;  %v231_v8 = vsel (!%p140_p9), %vm217_vm0, %v440_v7, 0  ;;  %v234_v10 = vsel (!%p140_p9), %vm217_vm0, %v441_v9, 0  ;;  %p162_p10 = scmp.lt.s32.totalorder (!%p140_p9), %s551_s16, 1  ;;  %v442_v11 = vld [vmem:[%s659_s1 + $0x28] sm:$0xff] (!%p140_p9)   ;;  %s159_s20 = sand.u32 (!%p140_p9), 1, %s497_s13   ;;  %vm280_vm2 = vcmask (!%p140_p9), 781312  }
  0x10   : > { %382 = vmatprep.subr.bf16.mxu0 (!%p140_p9), %v507_v1  ;;  %v237_v12 = vsel (!%p140_p9), %vm217_vm0, %v442_v11, 0  ;;  %s359_s24 = sshll.u32 (!%p140_p9), %s159_s20, 2  ;;  %v361_v14 = vld [vmem:[%s660_s2] ss:$0 sm:$0xff] (!%p140_p9)  ;;  %s370_s27 = sshll.u32 (!%p140_p9), %s551_s16, 6 }
  0x11   : > { %s161_s28 = scalar_lea.vmem (!%p140_p9), [#allocation2], %s359_s24  ;;  %s616_s5 = scalar_lea.hbm (!%p140_p9), %s661_s3, %s370_s27 }
  0x12   : > { %s296_s29 = sshll.u32 (!%p140_p9), %s161_s28, 4  ;;  %s509_s7 = smov (!%p140_p9), [#allocation2]   ;;  %s618_s29 = int_to_ptr.vmem [resolvable:$true] %s296_s29 }
  0x13   : > { %s443_s6 = scalar_lea.vmem (!%p140_p9), %s618_s29, 64  ;;  %s447_s8 = sshll.u32 (!%p140_p9), %s509_s7, 4  ;;  %s448_s8 = int_to_ptr.vmem [resolvable:$false] %s447_s8 }
  0x14   : > { %p444_p11 = scmp.ne.s32.totalorder (!%p140_p9), %s618_s29, %s443_s6  ;;  %p450_p0 = scmp.lt.s32.totalorder (!%p140_p9), %s618_s29, %s448_s8 }
  0x15   : > { %s163_s9 = scalar_select %p162_p10, %s551_s16, 1 }
  0x16   : > { %s283_s16 = scalar_lea.sflag [#allocation3], %s159_s20  ;;  %p445_p12 = pnand %p444_p11, %p568_p5 }
  0x17   : > { %383 = vmatpush3.bf16.xpose.msra.mxu0 %v225_v4  ;;  %s360_s10 = sshll.u32 %s163_s9, 2  ;;  %s449_s9 = scalar_lea.vmem %s448_s8, 128 }
  0x18   : > { %384 = vmatprep.subr.bf16.mxu0 %v507_v1  ;;  %s165_s19 = scalar_lea.vmem %s658_s0, %s360_s10  ;;  %p446_p13 = pneg %p445_p12 }
  0x19   : > { %v167_v13 = vld [vmem:[%s165_s19] sm:$0xf]  ;;  %p451_p1 = scmp.lt.s32.totalorder %s449_s9, %s443_s6 }
  0x1b   : > { %p452_p2 = por %p451_p1, %p450_p0 }
  0x1d   : > { %p453_p3 = pnand %p452_p2, %p446_p13 }
  0x1f   : > { %385 = vmatpush3.bf16.xpose.msra.mxu0 %v228_v6 }
  0x20   : > { %386 = vmatprep.subr.bf16.mxu0 %v507_v1 }
  0x27   : > { %387 = vmatpush3.bf16.xpose.msra.mxu0 %v231_v8 }
  0x28   : > { %388 = vmatprep.subr.bf16.mxu0 %v507_v1 }
  0x2f   : > { %389 = vmatpush3.bf16.xpose.msra.mxu0 %v234_v10 }
  0x30   : > { %390 = vmatprep.subr.bf16.mxu0 %v507_v1 }
  0x37   : > { %391 = vmatpush3.bf16.xpose.msra.mxu0 %v237_v12 }
  0x3e   : > { %393 = vmatmul.mubr.msk.bf16.vlgmr.msra.gmra.mrb[0].mxu0 %vm217_vm0, %v167_v13 }
 0x111   : > { %v273_v15 = vpop.f32.mrb[0].mxu0 }
 0x112   : > { %v274_v16 = vadd.f32 %v361_v14, %v273_v15  ;;  %v394_v17 = vpop.f32.mrb[1].mxu0 }
 0x113   : > { %v276_v18 = vpop.f32.mrb[2].mxu0 }
 0x114   : > { %v279_v19 = vpack.c.bf16 %v274_v16, %v274_v16  ;;  %v395_v20 = vpop.f32.mrb[3].mxu0 }
 0x116   : > { %281 = vst.msk [vmem:[%s161_s28] sm:$0xf] %vm280_vm2, %v279_v19 }
 0x117   : > { %456 = shalt.err (!%p453_p3)
}
 0x118   : > { %s457_s10 = scalar_lea.hbm %s616_s5, 64  ;;  %s461_s19 = scalar_lea.hbm %s661_s3, 128 }
 0x119   : > { %p458_p4 = scmp.ne.s32.totalorder %s616_s5, %s457_s10  ;;  %p462_p9 = scmp.lt.u32.totalorder %s616_s5, %s661_s3 }
 0x11a   : > { %p463_p10 = scmp.lt.u32.totalorder %s461_s19, %s457_s10  ;;  %p465_p12 = scmp.lt.u32.totalorder %s457_s10, %s616_s5 }
 0x11b   : > { %p459_p7 = pnand %p458_p4, %p568_p5 }
 0x11c   : > { %p464_p11 = por %p463_p10, %p462_p9 }
 0x11d   : > { %p460_p8 = pneg %p459_p7 }
 0x11e   : > { %p466_p13 = por %p465_p12, %p464_p11 }
 0x120   : > { %p467_p0 = pnand %p466_p13, %p460_p8 }
 0x122   : > { %470 = shalt.err (!%p467_p0)
}
 0x123   : > { %396 = dma.vmem_to_hbm [thread:$0]  (%p568_p5), %s618_s29, 64, %s616_s5, %s283_s16  }
 0x124 PF: > { %p402_p1 = scmp.ge.s32.totalorder %s505_s15, 2  ;;  %s308_s25 = sand.u32 1, %s493_s12  }
 0x125   : > { %s309_s26 = scalar_lea.sflag [#allocation3], %s308_s25 }
 0x126   : > { %p399_p2 = pnand %p402_p1, %p572_p6 }
 0x128   : > { %488 = dma.done.wait (!%p399_p2), %s309_s26, 64  }
 0x129   : > { %490 = vsyncadd (!%p399_p2), %s309_s26, 4294967232  ;;  %p13_p3 = scmp.ge.s32.totalorder %s555_s18, 4   ;;  %s664_s12 = smov %s497_s13 }
 0x12a   : > { %s665_s13 = smov %s501_s14  ;;  %s666_s14 = smov %s566_s21 }
 0x12b   : > { %s667_s15 = smov %s555_s18  ;;  %15 = sbr.rel (!%p13_p3) target bundleno = 3 (0x3), region = 67 }
 0x132   :  { %314 = vsyncpa [#allocation3], 1 }
 0x133   :  { %316 = vsyncpa [#allocation3 + $0x1], 1 }

</bundles_post_ra>
